<compile_context>
chip_gen: v7x
topology: tpu7x:2x2x1
jax: 0.10.0
libtpu: 0.0.40
codegen_flags: <defaults>
</compile_context>

<pallas_src>
import math

import jax
import jax.numpy as jnp
from jax.experimental import pallas as pl
from jax.experimental.pallas import tpu as pltpu  # noqa: F401  (TPU backend)

# ---- model hyper-params (small, consistent with module: n_heads=1, ff_dim=4) ----
D_MODEL = 128
N_HEADS = 1
FF_DIM = 4
FF_PAD = 128          # FFN inner dim zero-padded to lane width (== D_MODEL here)
N_PACK = 16           # rows in the packed small-param slab (padded to sublane multiple)
LN_EPS = 1e-5

# packed-slab row indices
R_BQ, R_BK, R_BV, R_BO, R_B1, R_B2 = 0, 1, 2, 3, 4, 5
R_LN1G, R_LN1B, R_LN2G, R_LN2B = 6, 7, 8, 9


def _layernorm(x, gamma, beta, eps=LN_EPS):
    mu = jnp.mean(x, axis=-1, keepdims=True)
    var = jnp.mean((x - mu) ** 2, axis=-1, keepdims=True)
    return (x - mu) * jax.lax.rsqrt(var + eps) * gamma + beta


def decoder_layer_kernel(x_ref, mask_ref, wqkv_ref, wo_ref, w1_ref, w2_ref,
                         pvec_ref, out_ref, attn_ref):
    B, S, _ = mask_ref.shape
    M, D = x_ref.shape          # M == B * S

    x = x_ref[...]              # (M, D) float32

    # small-param slab rows (each (1, D)); static sublane slices of one VMEM tile
    bq = pvec_ref[R_BQ:R_BQ + 1, :]
    bk = pvec_ref[R_BK:R_BK + 1, :]
    bv = pvec_ref[R_BV:R_BV + 1, :]
    bo = pvec_ref[R_BO:R_BO + 1, :]
    b1 = pvec_ref[R_B1:R_B1 + 1, :]
    b2 = pvec_ref[R_B2:R_B2 + 1, :]
    ln1g = pvec_ref[R_LN1G:R_LN1G + 1, :]
    ln1b = pvec_ref[R_LN1B:R_LN1B + 1, :]
    ln2g = pvec_ref[R_LN2G:R_LN2G + 1, :]
    ln2b = pvec_ref[R_LN2B:R_LN2B + 1, :]

    # ---- fused QKV projection: one (M, D) x (D, 3D) matmul ----
    qkv = jnp.dot(x, wqkv_ref[...], preferred_element_type=jnp.float32)   # (M, 3D)
    # Wq / bq were pre-scaled by 1/sqrt(d_k) at packing time.
    q = (qkv[:, :D] + bq).reshape(B, S, D)
    k = (qkv[:, D:2 * D] + bk).reshape(B, S, D)
    v = (qkv[:, 2 * D:] + bv).reshape(B, S, D)

    # ---- masked softmax attention (contraction on last dims -> no explicit k transpose) ----
    scores = jnp.einsum("bqd,bkd->bqk", q, k,
                        preferred_element_type=jnp.float32)               # (B, S, S)
    # additive mask bias computed in-kernel: 0 where allowed, -1e9 where masked
    scores = scores + (mask_ref[...] - 1.0) * 1e9
    m = jnp.max(scores, axis=-1, keepdims=True)
    p = jnp.exp(scores - m)
    attn = p * pl.reciprocal(jnp.sum(p, axis=-1, keepdims=True), approx=True)

    # single vectorized store of the attention weights (B, 1, S, S)
    attn_ref[...] = attn.reshape(B, 1, S, S)

    ctx = jnp.einsum("bqk,bkd->bqd", attn, v,
                     preferred_element_type=jnp.float32).reshape(M, D)
    attn_out = jnp.dot(ctx, wo_ref[...], preferred_element_type=jnp.float32) + bo

    # ---- residual + LayerNorm 1 (dropout_1 = identity) ----
    h = _layernorm(x + attn_out, ln1g, ln1b)

    # ---- positionwise FFN: Linear(D->F_pad) -> ReLU -> Linear(F_pad->D), pad cols are zero ----
    ff = jnp.dot(h, w1_ref[...], preferred_element_type=jnp.float32) + b1
    ff = jnp.maximum(ff, 0.0)
    ff = jnp.dot(ff, w2_ref[...], preferred_element_type=jnp.float32) + b2

    # ---- residual + LayerNorm 2 (dropout_2 = identity) ----
    out_ref[...] = _layernorm(h + ff, ln2g, ln2b)


def pack_params(p, d_model=D_MODEL, n_heads=N_HEADS, ff_dim=FF_DIM, ff_pad=FF_PAD):
    """One-time wrapper-side repacking: fuse QKV, fold 1/sqrt(d_k) into Wq/bq,
    zero-pad the FFN inner dim to lane width, pack all (1, D) vectors into one slab."""
    assert ff_pad == d_model, "packed slab assumes FF_PAD == D_MODEL"
    scale = 1.0 / math.sqrt(d_model // n_heads)

    wqkv = jnp.concatenate([p["wq"] * scale, p["wk"], p["wv"]], axis=1)   # (D, 3D)
    w1 = jnp.zeros((d_model, ff_pad), jnp.float32).at[:, :ff_dim].set(p["w1"])
    w2 = jnp.zeros((ff_pad, d_model), jnp.float32).at[:ff_dim, :].set(p["w2"])
    b1 = jnp.zeros((1, d_model), jnp.float32).at[:, :ff_dim].set(p["b1"])

    rows = jnp.concatenate(
        [p["bq"] * scale, p["bk"], p["bv"], p["bo"], b1, p["b2"],
         p["ln1_g"], p["ln1_b"], p["ln2_g"], p["ln2_b"]], axis=0)         # (10, D)
    pvec = jnp.zeros((N_PACK, d_model), jnp.float32).at[:rows.shape[0]].set(rows)

    return {"wqkv": wqkv, "wo": p["wo"], "w1": w1, "w2": w2, "pvec": pvec}


@jax.jit
def decoder_layer(x, mask, packed):
    B, S, D = x.shape
    x2d = x.reshape(B * S, D)                 # flatten batch into the matmul M dim

    out2d, attn = pl.pallas_call(
        decoder_layer_kernel,
        out_shape=(
            jax.ShapeDtypeStruct((B * S, D), jnp.float32),
            jax.ShapeDtypeStruct((B, N_HEADS, S, S), jnp.float32),
        ),
    )(x2d, mask, packed["wqkv"], packed["wo"], packed["w1"],
      packed["w2"], packed["pvec"])

    return out2d.reshape(B, S, D), attn


def reference(x, mask, p):
    """Pure-JAX reference implementing the original PyTorch semantics."""
    q = x @ p["wq"] + p["bq"]
    k = x @ p["wk"] + p["bk"]
    v = x @ p["wv"] + p["bv"]
    scores = (q @ jnp.swapaxes(k, -1, -2)) / jnp.sqrt(jnp.float32(q.shape[-1]))
    scores = jnp.where(mask == 0.0, -1e9, scores)
    attn = jax.nn.softmax(scores, axis=-1)
    ctx = attn @ v
    attn_out = ctx @ p["wo"] + p["bo"]
    h = _layernorm(x + attn_out, p["ln1_g"], p["ln1_b"])
    ff = jnp.maximum(h @ p["w1"] + p["b1"], 0.0) @ p["w2"] + p["b2"]
    out = _layernorm(h + ff, p["ln2_g"], p["ln2_b"])
    return out, attn[:, None, :, :]


def init_params(key, d_model=D_MODEL, ff_dim=FF_DIM):
    keys = jax.random.split(key, 8)
    s = 0.02
    return {
        "wq": jax.random.normal(keys[0], (d_model, d_model), jnp.float32) * s,
        "bq": jnp.zeros((1, d_model), jnp.float32),
        "wk": jax.random.normal(keys[1], (d_model, d_model), jnp.float32) * s,
        "bk": jnp.zeros((1, d_model), jnp.float32),
        "wv": jax.random.normal(keys[2], (d_model, d_model), jnp.float32) * s,
        "bv": jnp.zeros((1, d_model), jnp.float32),
        "wo": jax.random.normal(keys[3], (d_model, d_model), jnp.float32) * s,
        "bo": jnp.zeros((1, d_model), jnp.float32),
        "ln1_g": jnp.ones((1, d_model), jnp.float32),
        "ln1_b": jnp.zeros((1, d_model), jnp.float32),
        "w1": jax.random.normal(keys[4], (d_model, ff_dim), jnp.float32) * s,
        "b1": jnp.zeros((1, ff_dim), jnp.float32),
        "w2": jax.random.normal(keys[5], (ff_dim, d_model), jnp.float32) * s,
        "b2": jnp.zeros((1, d_model), jnp.float32),
        "ln2_g": jnp.ones((1, d_model), jnp.float32),
        "ln2_b": jnp.zeros((1, d_model), jnp.float32),
    }


if __name__ == "__main__":
    B, S = 2, 8
    key = jax.random.PRNGKey(0)
    kx, kp = jax.random.split(key)

    x = jax.random.normal(kx, (B, S, D_MODEL), jnp.float32)
    # causal mask: 1.0 where attention is allowed
    causal = jnp.tril(jnp.ones((S, S), jnp.float32))
    mask = jnp.broadcast_to(causal, (B, S, S))

    params = init_params(kp)
    packed = pack_params(params)

    out, attn = decoder_layer(x, mask, packed)
    out = jax.block_until_ready(out)
    attn = jax.block_until_ready(attn)

    ref_out, ref_attn = reference(x, mask, params)
    assert out.shape == (B, S, D_MODEL)
    assert attn.shape == (B, N_HEADS, S, S)
    # tolerance loosened slightly for the approx (EUP) softmax reciprocal
    assert jnp.allclose(out, ref_out, atol=2e-3, rtol=2e-3)
    assert jnp.allclose(attn, ref_attn, atol=2e-3, rtol=2e-3)

    print("KERNEL_OK")
</pallas_src>

<mosaic_0001>
module attributes {stable_mosaic.version = 11 : i64} {
  func.func @decoder_layer_kernel(%arg0: memref<16x128xf32, #tpu.memory_space<vmem>>, %arg1: memref<2x8x8xf32, #tpu.memory_space<vmem>>, %arg2: memref<128x384xf32, #tpu.memory_space<vmem>>, %arg3: memref<128x128xf32, #tpu.memory_space<vmem>>, %arg4: memref<128x128xf32, #tpu.memory_space<vmem>>, %arg5: memref<128x128xf32, #tpu.memory_space<vmem>>, %arg6: memref<16x128xf32, #tpu.memory_space<vmem>>, %arg7: memref<16x128xf32, #tpu.memory_space<vmem>>, %arg8: memref<2x1x8x8xf32, #tpu.memory_space<vmem>>) attributes {dimension_semantics = [], scalar_prefetch = 0 : i64, scratch_operands = 0 : i64, tpu.core_type = #tpu.core_type<tc>} {
    %c0 = arith.constant 0 : index
    %c0_0 = arith.constant 0 : index
    %0 = vector.load %arg0[%c0, %c0_0] : memref<16x128xf32, #tpu.memory_space<vmem>>, vector<16x128xf32>
    %c0_1 = arith.constant 0 : index
    %c0_2 = arith.constant 0 : index
    %1 = vector.load %arg6[%c0_1, %c0_2] : memref<16x128xf32, #tpu.memory_space<vmem>>, vector<1x128xf32>
    %c1 = arith.constant 1 : index
    %c0_3 = arith.constant 0 : index
    %2 = vector.load %arg6[%c1, %c0_3] : memref<16x128xf32, #tpu.memory_space<vmem>>, vector<1x128xf32>
    %c2 = arith.constant 2 : index
    %c0_4 = arith.constant 0 : index
    %3 = vector.load %arg6[%c2, %c0_4] : memref<16x128xf32, #tpu.memory_space<vmem>>, vector<1x128xf32>
    %c3 = arith.constant 3 : index
    %c0_5 = arith.constant 0 : index
    %4 = vector.load %arg6[%c3, %c0_5] : memref<16x128xf32, #tpu.memory_space<vmem>>, vector<1x128xf32>
    %c4 = arith.constant 4 : index
    %c0_6 = arith.constant 0 : index
    %5 = vector.load %arg6[%c4, %c0_6] : memref<16x128xf32, #tpu.memory_space<vmem>>, vector<1x128xf32>
    %c5 = arith.constant 5 : index
    %c0_7 = arith.constant 0 : index
    %6 = vector.load %arg6[%c5, %c0_7] : memref<16x128xf32, #tpu.memory_space<vmem>>, vector<1x128xf32>
    %c6 = arith.constant 6 : index
    %c0_8 = arith.constant 0 : index
    %7 = vector.load %arg6[%c6, %c0_8] : memref<16x128xf32, #tpu.memory_space<vmem>>, vector<1x128xf32>
    %c7 = arith.constant 7 : index
    %c0_9 = arith.constant 0 : index
    %8 = vector.load %arg6[%c7, %c0_9] : memref<16x128xf32, #tpu.memory_space<vmem>>, vector<1x128xf32>
    %c8 = arith.constant 8 : index
    %c0_10 = arith.constant 0 : index
    %9 = vector.load %arg6[%c8, %c0_10] : memref<16x128xf32, #tpu.memory_space<vmem>>, vector<1x128xf32>
    %c9 = arith.constant 9 : index
    %c0_11 = arith.constant 0 : index
    %10 = vector.load %arg6[%c9, %c0_11] : memref<16x128xf32, #tpu.memory_space<vmem>>, vector<1x128xf32>
    %c0_12 = arith.constant 0 : index
    %c0_13 = arith.constant 0 : index
    %11 = vector.load %arg2[%c0_12, %c0_13] : memref<128x384xf32, #tpu.memory_space<vmem>>, vector<128x384xf32>
    %cst = arith.constant dense<0.000000e+00> : vector<16x384xf32>
    %12 = tpu.matmul %0, %11, %cst {dimension_numbers = #tpu.dot_dimension_numbers<[1], [0], [0], [1], [0, 0, 1, 1], [], []>} : vector<16x128xf32>, vector<128x384xf32>, vector<16x384xf32> -> vector<16x384xf32>
    %13 = vector.extract_strided_slice %12 {offsets = [0, 0], sizes = [16, 128], strides = [1, 1]} : vector<16x384xf32> to vector<16x128xf32>
    %14 = vector.broadcast %1 : vector<1x128xf32> to vector<16x128xf32>
    %15 = arith.addf %13, %14 : vector<16x128xf32>
    %16 = vector.shape_cast %15 : vector<16x128xf32> to vector<2x8x128xf32>
    %17 = vector.extract_strided_slice %12 {offsets = [0, 128], sizes = [16, 128], strides = [1, 1]} : vector<16x384xf32> to vector<16x128xf32>
    %18 = vector.broadcast %2 : vector<1x128xf32> to vector<16x128xf32>
    %19 = arith.addf %17, %18 : vector<16x128xf32>
    %20 = vector.shape_cast %19 : vector<16x128xf32> to vector<2x8x128xf32>
    %21 = vector.extract_strided_slice %12 {offsets = [0, 256], sizes = [16, 128], strides = [1, 1]} : vector<16x384xf32> to vector<16x128xf32>
    %22 = vector.broadcast %3 : vector<1x128xf32> to vector<16x128xf32>
    %23 = arith.addf %21, %22 : vector<16x128xf32>
    %24 = vector.shape_cast %23 : vector<16x128xf32> to vector<2x8x128xf32>
    "tpu.trace_start"() <{level = 10 : i32, message = "bqd,bkd->bqk"}> : () -> ()
    %cst_14 = arith.constant dense<0.000000e+00> : vector<2x8x8xf32>
    %25 = tpu.matmul %16, %20, %cst_14 {dimension_numbers = #tpu.dot_dimension_numbers<[2], [2], [1], [1], [0, 0, 0, 1, 1, 1], [0], [0]>} : vector<2x8x128xf32>, vector<2x8x128xf32>, vector<2x8x8xf32> -> vector<2x8x8xf32>
    "tpu.trace_stop"() : () -> ()
    %c0_15 = arith.constant 0 : index
    %c0_16 = arith.constant 0 : index
    %c0_17 = arith.constant 0 : index
    %26 = vector.load %arg1[%c0_15, %c0_16, %c0_17] : memref<2x8x8xf32, #tpu.memory_space<vmem>>, vector<2x8x8xf32>
    %cst_18 = arith.constant 1.000000e+00 : f32
    %27 = vector.broadcast %cst_18 : f32 to vector<2x8x8xf32>
    %28 = arith.subf %26, %27 : vector<2x8x8xf32>
    %cst_19 = arith.constant 1.000000e+09 : f32
    %29 = vector.broadcast %cst_19 : f32 to vector<2x8x8xf32>
    %30 = arith.mulf %28, %29 : vector<2x8x8xf32>
    %31 = arith.addf %25, %30 : vector<2x8x8xf32>
    %cst_20 = arith.constant dense<0xFF800000> : vector<2x8xf32>
    %32 = vector.multi_reduction <maximumf>, %31, %cst_20 [2] : vector<2x8x8xf32> to vector<2x8xf32>
    %33 = vector.shape_cast %32 : vector<2x8xf32> to vector<2x8x1xf32>
    %34 = vector.broadcast %33 : vector<2x8x1xf32> to vector<2x8x8xf32>
    %35 = arith.subf %31, %34 : vector<2x8x8xf32>
    %36 = math.exp %35 : vector<2x8x8xf32>
    %cst_21 = arith.constant dense<0.000000e+00> : vector<2x8xf32>
    %37 = vector.multi_reduction <add>, %36, %cst_21 [2] : vector<2x8x8xf32> to vector<2x8xf32>
    %38 = vector.shape_cast %37 : vector<2x8xf32> to vector<2x8x1xf32>
    %39 = tpu.reciprocal %38 {approx = true} : vector<2x8x1xf32> -> vector<2x8x1xf32>
    %40 = vector.broadcast %39 : vector<2x8x1xf32> to vector<2x8x8xf32>
    %41 = arith.mulf %36, %40 : vector<2x8x8xf32>
    %42 = vector.shape_cast %41 : vector<2x8x8xf32> to vector<2x1x8x8xf32>
    %c0_22 = arith.constant 0 : index
    %c0_23 = arith.constant 0 : index
    %c0_24 = arith.constant 0 : index
    %c0_25 = arith.constant 0 : index
    %43 = vector.load %arg8[%c0_22, %c0_23, %c0_24, %c0_25] : memref<2x1x8x8xf32, #tpu.memory_space<vmem>>, vector<2x1x8x8xf32>
    tpu.vector_store %arg8[%c0_22, %c0_23, %c0_24, %c0_25], %42 {strides = array<i32>} : memref<2x1x8x8xf32, #tpu.memory_space<vmem>>, vector<2x1x8x8xf32>,
    "tpu.trace_start"() <{level = 10 : i32, message = "bqk,bkd->bqd"}> : () -> ()
    %cst_26 = arith.constant dense<0.000000e+00> : vector<2x8x128xf32>
    %44 = tpu.matmul %41, %24, %cst_26 {dimension_numbers = #tpu.dot_dimension_numbers<[2], [1], [1], [2], [0, 0, 0, 1, 1, 2], [0], [0]>} : vector<2x8x8xf32>, vector<2x8x128xf32>, vector<2x8x128xf32> -> vector<2x8x128xf32>
    "tpu.trace_stop"() : () -> ()
    %45 = vector.shape_cast %44 : vector<2x8x128xf32> to vector<16x128xf32>
    %c0_27 = arith.constant 0 : index
    %c0_28 = arith.constant 0 : index
    %46 = vector.load %arg3[%c0_27, %c0_28] : memref<128x128xf32, #tpu.memory_space<vmem>>, vector<128x128xf32>
    %cst_29 = arith.constant dense<0.000000e+00> : vector<16x128xf32>
    %47 = tpu.matmul %45, %46, %cst_29 {dimension_numbers = #tpu.dot_dimension_numbers<[1], [0], [0], [1], [0, 0, 1, 1], [], []>} : vector<16x128xf32>, vector<128x128xf32>, vector<16x128xf32> -> vector<16x128xf32>
    %48 = vector.broadcast %4 : vector<1x128xf32> to vector<16x128xf32>
    %49 = arith.addf %47, %48 : vector<16x128xf32>
    %50 = arith.addf %0, %49 : vector<16x128xf32>
    %cst_30 = arith.constant dense<0.000000e+00> : vector<16xf32>
    %51 = vector.multi_reduction <add>, %50, %cst_30 [1] : vector<16x128xf32> to vector<16xf32>
    %52 = vector.shape_cast %51 : vector<16xf32> to vector<16x1xf32>
    %cst_31 = arith.constant 1.280000e+02 : f32
    %53 = vector.broadcast %cst_31 : f32 to vector<16x1xf32>
    %54 = arith.divf %52, %53 : vector<16x1xf32>
    %55 = vector.broadcast %54 : vector<16x1xf32> to vector<16x128xf32>
    %56 = arith.subf %50, %55 : vector<16x128xf32>
    %57 = arith.mulf %56, %56 : vector<16x128xf32>
    %cst_32 = arith.constant dense<0.000000e+00> : vector<16xf32>
    %58 = vector.multi_reduction <add>, %57, %cst_32 [1] : vector<16x128xf32> to vector<16xf32>
    %59 = vector.shape_cast %58 : vector<16xf32> to vector<16x1xf32>
    %cst_33 = arith.constant 1.280000e+02 : f32
    %60 = vector.broadcast %cst_33 : f32 to vector<16x1xf32>
    %61 = arith.divf %59, %60 : vector<16x1xf32>
    %62 = vector.broadcast %54 : vector<16x1xf32> to vector<16x128xf32>
    %63 = arith.subf %50, %62 : vector<16x128xf32>
    %cst_34 = arith.constant 9.99999974E-6 : f32
    %64 = vector.broadcast %cst_34 : f32 to vector<16x1xf32>
    %65 = arith.addf %61, %64 : vector<16x1xf32>
    %66 = math.rsqrt %65 : vector<16x1xf32>
    %67 = vector.broadcast %66 : vector<16x1xf32> to vector<16x128xf32>
    %68 = arith.mulf %63, %67 : vector<16x128xf32>
    %69 = vector.broadcast %7 : vector<1x128xf32> to vector<16x128xf32>
    %70 = arith.mulf %68, %69 : vector<16x128xf32>
    %71 = vector.broadcast %8 : vector<1x128xf32> to vector<16x128xf32>
    %72 = arith.addf %70, %71 : vector<16x128xf32>
    %c0_35 = arith.constant 0 : index
    %c0_36 = arith.constant 0 : index
    %73 = vector.load %arg4[%c0_35, %c0_36] : memref<128x128xf32, #tpu.memory_space<vmem>>, vector<128x128xf32>
    %cst_37 = arith.constant dense<0.000000e+00> : vector<16x128xf32>
    %74 = tpu.matmul %72, %73, %cst_37 {dimension_numbers = #tpu.dot_dimension_numbers<[1], [0], [0], [1], [0, 0, 1, 1], [], []>} : vector<16x128xf32>, vector<128x128xf32>, vector<16x128xf32> -> vector<16x128xf32>
    %75 = vector.broadcast %5 : vector<1x128xf32> to vector<16x128xf32>
    %76 = arith.addf %74, %75 : vector<16x128xf32>
    %cst_38 = arith.constant 0.000000e+00 : f32
    %77 = vector.broadcast %cst_38 : f32 to vector<16x128xf32>
    %78 = arith.maximumf %76, %77 : vector<16x128xf32>
    %c0_39 = arith.constant 0 : index
    %c0_40 = arith.constant 0 : index
    %79 = vector.load %arg5[%c0_39, %c0_40] : memref<128x128xf32, #tpu.memory_space<vmem>>, vector<128x128xf32>
    %cst_41 = arith.constant dense<0.000000e+00> : vector<16x128xf32>
    %80 = tpu.matmul %78, %79, %cst_41 {dimension_numbers = #tpu.dot_dimension_numbers<[1], [0], [0], [1], [0, 0, 1, 1], [], []>} : vector<16x128xf32>, vector<128x128xf32>, vector<16x128xf32> -> vector<16x128xf32>
    %81 = vector.broadcast %6 : vector<1x128xf32> to vector<16x128xf32>
    %82 = arith.addf %80, %81 : vector<16x128xf32>
    %83 = arith.addf %72, %82 : vector<16x128xf32>
    %cst_42 = arith.constant dense<0.000000e+00> : vector<16xf32>
    %84 = vector.multi_reduction <add>, %83, %cst_42 [1] : vector<16x128xf32> to vector<16xf32>
    %85 = vector.shape_cast %84 : vector<16xf32> to vector<16x1xf32>
    %cst_43 = arith.constant 1.280000e+02 : f32
    %86 = vector.broadcast %cst_43 : f32 to vector<16x1xf32>
    %87 = arith.divf %85, %86 : vector<16x1xf32>
    %88 = vector.broadcast %87 : vector<16x1xf32> to vector<16x128xf32>
    %89 = arith.subf %83, %88 : vector<16x128xf32>
    %90 = arith.mulf %89, %89 : vector<16x128xf32>
    %cst_44 = arith.constant dense<0.000000e+00> : vector<16xf32>
    %91 = vector.multi_reduction <add>, %90, %cst_44 [1] : vector<16x128xf32> to vector<16xf32>
    %92 = vector.shape_cast %91 : vector<16xf32> to vector<16x1xf32>
    %cst_45 = arith.constant 1.280000e+02 : f32
    %93 = vector.broadcast %cst_45 : f32 to vector<16x1xf32>
    %94 = arith.divf %92, %93 : vector<16x1xf32>
    %95 = vector.broadcast %87 : vector<16x1xf32> to vector<16x128xf32>
    %96 = arith.subf %83, %95 : vector<16x128xf32>
    %cst_46 = arith.constant 9.99999974E-6 : f32
    %97 = vector.broadcast %cst_46 : f32 to vector<16x1xf32>
    %98 = arith.addf %94, %97 : vector<16x1xf32>
    %99 = math.rsqrt %98 : vector<16x1xf32>
    %100 = vector.broadcast %99 : vector<16x1xf32> to vector<16x128xf32>
    %101 = arith.mulf %96, %100 : vector<16x128xf32>
    %102 = vector.broadcast %9 : vector<1x128xf32> to vector<16x128xf32>
    %103 = arith.mulf %101, %102 : vector<16x128xf32>
    %104 = vector.broadcast %10 : vector<1x128xf32> to vector<16x128xf32>
    %105 = arith.addf %103, %104 : vector<16x128xf32>
    %c0_47 = arith.constant 0 : index
    %c0_48 = arith.constant 0 : index
    %106 = vector.load %arg7[%c0_47, %c0_48] : memref<16x128xf32, #tpu.memory_space<vmem>>, vector<16x128xf32>
    tpu.vector_store %arg7[%c0_47, %c0_48], %105 {strides = array<i32>} : memref<16x128xf32, #tpu.memory_space<vmem>>, vector<16x128xf32>,
    return
  }
}

</mosaic_0001>

<bundles_post_ra>
// kernel: decoder_layer.1
= control target key start
LH: loop header
LB: loop body
LE: loop exit
PB: predicated region body
PF: predicated region fallthrough
CT: control target
= control target key end

     0   :  { %14 = vsyncpa [#allocation3], 0  ;;  %s1973_s0 = inlined_call_operand.hbm [shape: f32[16,128], index: 0, kind: input, shape index: {}]   ;;  %s1974_s1 = inlined_call_operand.hbm [shape: f32[2,8,8], index: 1, kind: input, shape index: {}]   ;;  %s1975_s2 = inlined_call_operand.hbm [shape: f32[128,384], index: 2, kind: input, shape index: {}]   ;;  %s1976_s3 = inlined_call_operand.hbm [shape: f32[128,128], index: 3, kind: input, shape index: {}]   ;;  %s1977_s4 = inlined_call_operand.hbm [shape: f32[128,128], index: 4, kind: input, shape index: {}]   ;;  %s1978_s5 = inlined_call_operand.hbm [shape: f32[128,128], index: 5, kind: input, shape index: {}]   ;;  %s1979_s6 = inlined_call_operand.hbm [shape: f32[16,128], index: 6, kind: input, shape index: {}]   ;;  %s1980_s7 = inlined_call_operand.hbm [shape: f32[16,128], index: 7, kind: output, shape index: {0}]   ;;  %s1981_s8 = inlined_call_operand.hbm [shape: f32[2,1,8,8], index: 8, kind: output, shape index: {1}]  }
   0x1   :  { %15 = vsyncpa [#allocation6], 0 }
   0x2   :  { %16 = vsyncpa [#allocation9], 0 }
   0x3   :  { %17 = vsyncpa [#allocation12], 0 }
   0x4   :  { %18 = vsyncpa [#allocation4], 0 }
   0x5   :  { %19 = vsyncpa [#allocation16], 0  ;;  %s1725_s27 = smov [#allocation5]   ;;  %s1726_s29 = smov [#allocation8]  }
   0x6   :  { %s37_s28 = sshll.u32 %s1725_s27, 4  ;;  %s61_s30 = sshll.u32 %s1726_s29, 4  ;;  %s38_s28 = int_to_ptr.vmem [resolvable:$true] %s37_s28  ;;  %s1785_s30 = int_to_ptr.vmem [resolvable:$true] %s61_s30 }
   0x7   :  { %s1515_s11 = scalar_lea.hbm %s1974_s1, 256 }
   0x8   :  { %p1516_p0 = scmp.ne.s32.totalorder %s1974_s1, %s1515_s11  ;;  %p1519_p1 = scmp.lt.u32.totalorder %s1515_s11, %s1974_s1 }
   0xa   :  { %p1521_p2 = pnand %p1519_p1, %p1516_p0 }
   0xc   :  { %1524 = shalt.err (!%p1521_p2)
}
   0xd   :  { %s1525_s16 = scalar_lea.vmem %s38_s28, 256  ;;  %p1530_p4 = scmp.lt.s32.totalorder %s38_s28, %s38_s28 }
   0xe   :  { %p1526_p3 = scmp.ne.s32.totalorder %s38_s28, %s1525_s16  ;;  %p1531_p5 = scmp.lt.s32.totalorder %s1525_s16, %s1525_s16 }
  0x10   :  { %p1532_p6 = por %p1531_p5, %p1530_p4 }
  0x12   :  { %p1533_p7 = pnand %p1532_p6, %p1526_p3 }
  0x14   :  { %1536 = shalt.err (!%p1533_p7)
}
  0x15   :  { %s1727_s17 = smov 128   ;;  %s1728_s18 = smov 8  }
  0x16   :  { %43 = dma.hbm_to_vmem [thread:$0]  %s1974_s1, 256, %s38_s28, [#allocation6], %s1727_s17, %s1727_s17, %s1728_s18  }
  0x17   :  { %s1537_s23 = scalar_lea.hbm %s1976_s3, 2048 }
  0x18   :  { %p1538_p8 = scmp.ne.s32.totalorder %s1976_s3, %s1537_s23  ;;  %p1541_p9 = scmp.lt.u32.totalorder %s1537_s23, %s1976_s3 }
  0x1a   :  { %p1543_p10 = pnand %p1541_p9, %p1538_p8 }
  0x1c   :  { %1546 = shalt.err (!%p1543_p10)
}
  0x1d   :  { %s1547_s29 = scalar_lea.vmem %s1785_s30, 2048  ;;  %p1552_p12 = scmp.lt.s32.totalorder %s1785_s30, %s1785_s30 }
  0x1e   :  { %p1548_p11 = scmp.ne.s32.totalorder %s1785_s30, %s1547_s29  ;;  %p1553_p13 = scmp.lt.s32.totalorder %s1547_s29, %s1547_s29 }
  0x20   :  { %p1554_p0 = por %p1553_p13, %p1552_p12 }
  0x22   :  { %p1555_p1 = pnand %p1554_p0, %p1548_p11 }
  0x24   :  { %1558 = shalt.err (!%p1555_p1)
}
  0x25   :  { %67 = dma.hbm_to_vmem [thread:$0]  %s1976_s3, 2048, %s1785_s30, [#allocation9], %s1727_s17, %s1727_s17, %s1728_s18  }
  0x26   :  { %s1729_s9 = smov [#allocation11]   ;;  %s1730_s11 = smov [#allocation2]  }
  0x27   :  { %s85_s10 = sshll.u32 %s1729_s9, 4  ;;  %s25_s12 = sshll.u32 %s1730_s11, 4  ;;  %s86_s10 = int_to_ptr.vmem [resolvable:$true] %s85_s10  ;;  %s1822_s12 = int_to_ptr.vmem [resolvable:$true] %s25_s12 }
  0x28   :  { %s1559_s15 = scalar_lea.hbm %s1978_s5, 2048 }
  0x29   :  { %p1560_p2 = scmp.ne.s32.totalorder %s1978_s5, %s1559_s15  ;;  %p1563_p3 = scmp.lt.u32.totalorder %s1559_s15, %s1978_s5 }
  0x2b   :  { %p1565_p4 = pnand %p1563_p3, %p1560_p2 }
  0x2d   :  { %1568 = shalt.err (!%p1565_p4)
}
  0x2e   :  { %s1569_s3 = scalar_lea.vmem %s86_s10, 2048  ;;  %p1574_p6 = scmp.lt.s32.totalorder %s86_s10, %s86_s10 }
  0x2f   :  { %p1570_p5 = scmp.ne.s32.totalorder %s86_s10, %s1569_s3  ;;  %p1575_p7 = scmp.lt.s32.totalorder %s1569_s3, %s1569_s3 }
  0x31   :  { %p1576_p8 = por %p1575_p7, %p1574_p6 }
  0x33   :  { %p1577_p9 = pnand %p1576_p8, %p1570_p5 }
  0x35   :  { %1580 = shalt.err (!%p1577_p9)
}
  0x36   :  { %91 = dma.hbm_to_vmem [thread:$0]  %s1978_s5, 2048, %s86_s10, [#allocation12], %s1727_s17, %s1727_s17, %s1728_s18  }
  0x37   :  { %s1581_s25 = scalar_lea.hbm %s1973_s0, 256 }
  0x38   :  { %p1582_p10 = scmp.ne.s32.totalorder %s1973_s0, %s1581_s25  ;;  %p1585_p11 = scmp.lt.u32.totalorder %s1581_s25, %s1973_s0 }
  0x3a   :  { %p1587_p12 = pnand %p1585_p11, %p1582_p10 }
  0x3c   :  { %1590 = shalt.err (!%p1587_p12)
}
  0x3d   :  { %s1591_s28 = scalar_lea.vmem %s1822_s12, 256  ;;  %p1596_p0 = scmp.lt.s32.totalorder %s1822_s12, %s1822_s12 }
  0x3e   :  { %p1592_p13 = scmp.ne.s32.totalorder %s1822_s12, %s1591_s28  ;;  %p1597_p1 = scmp.lt.s32.totalorder %s1591_s28, %s1591_s28 }
  0x40   :  { %p1598_p2 = por %p1597_p1, %p1596_p0 }
  0x42   :  { %p1599_p3 = pnand %p1598_p2, %p1592_p13 }
  0x44   :  { %1602 = shalt.err (!%p1599_p3)
}
  0x45   :  { %31 = dma.hbm_to_vmem [thread:$0]  %s1973_s0, 256, %s1822_s12, [#allocation3], %s1727_s17, %s1727_s17, %s1728_s18  }
  0x46   :  { %s1731_s10 = smov [#allocation7]   ;;  %s1603_s15 = scalar_lea.hbm %s1975_s2, 6144 }
  0x47   :  { %s49_s11 = sshll.u32 %s1731_s10, 4  ;;  %p1604_p4 = scmp.ne.s32.totalorder %s1975_s2, %s1603_s15  ;;  %s50_s11 = int_to_ptr.vmem [resolvable:$true] %s49_s11 }
  0x48   :  { %p1607_p5 = scmp.lt.u32.totalorder %s1603_s15, %s1975_s2 }
  0x4a   :  { %p1609_p6 = pnand %p1607_p5, %p1604_p4 }
  0x4c   :  { %1612 = shalt.err (!%p1609_p6)
}
  0x4d   :  { %s1613_s3 = scalar_lea.vmem %s50_s11, 6144  ;;  %p1618_p8 = scmp.lt.s32.totalorder %s50_s11, %s50_s11 }
  0x4e   :  { %p1614_p7 = scmp.ne.s32.totalorder %s50_s11, %s1613_s3  ;;  %p1619_p9 = scmp.lt.s32.totalorder %s1613_s3, %s1613_s3 }
  0x50   :  { %p1620_p10 = por %p1619_p9, %p1618_p8 }
  0x52   :  { %p1621_p11 = pnand %p1620_p10, %p1614_p7 }
  0x54   :  { %1624 = shalt.err (!%p1621_p11)
}
  0x55   :  { %s1732_s0 = smov 384   ;;  %s1733_s12 = smov 24  }
  0x56   :  { %55 = dma.hbm_to_vmem [thread:$0]  %s1975_s2, 6144, %s50_s11, [#allocation6], %s1732_s0, %s1732_s0, %s1733_s12  }
  0x57   :  { %s1734_s23 = smov [#allocation10]   ;;  %s1735_s25 = smov [#allocation13]  }
  0x58   :  { %s73_s24 = sshll.u32 %s1734_s23, 4  ;;  %s97_s26 = sshll.u32 %s1735_s25, 4  ;;  %s74_s24 = int_to_ptr.vmem [resolvable:$true] %s73_s24  ;;  %s98_s26 = int_to_ptr.vmem [resolvable:$true] %s97_s26 }
  0x59   :  { %s1625_s1 = scalar_lea.hbm %s1977_s4, 2048 }
  0x5a   :  { %p1626_p12 = scmp.ne.s32.totalorder %s1977_s4, %s1625_s1  ;;  %p1629_p13 = scmp.lt.u32.totalorder %s1625_s1, %s1977_s4 }
  0x5c   :  { %p1631_p0 = pnand %p1629_p13, %p1626_p12 }
  0x5e   :  { %1634 = shalt.err (!%p1631_p0)
}
  0x5f   :  { %s1635_s2 = scalar_lea.vmem %s74_s24, 2048  ;;  %p1640_p2 = scmp.lt.s32.totalorder %s74_s24, %s74_s24 }
  0x60   :  { %p1636_p1 = scmp.ne.s32.totalorder %s74_s24, %s1635_s2  ;;  %p1641_p3 = scmp.lt.s32.totalorder %s1635_s2, %s1635_s2 }
  0x62   :  { %p1642_p4 = por %p1641_p3, %p1640_p2 }
  0x64   :  { %p1643_p5 = pnand %p1642_p4, %p1636_p1 }
  0x66   :  { %1646 = shalt.err (!%p1643_p5)
}
  0x67   :  { %79 = dma.hbm_to_vmem [thread:$0]  %s1977_s4, 2048, %s74_s24, [#allocation9], %s1727_s17, %s1727_s17, %s1728_s18  }
  0x68   :  { %s1647_s16 = scalar_lea.hbm %s1979_s6, 256 }
  0x69   :  { %p1648_p6 = scmp.ne.s32.totalorder %s1979_s6, %s1647_s16  ;;  %p1651_p7 = scmp.lt.u32.totalorder %s1647_s16, %s1979_s6 }
  0x6b   :  { %p1653_p8 = pnand %p1651_p7, %p1648_p6 }
  0x6d   :  { %1656 = shalt.err (!%p1653_p8)
}
  0x6e   :  { %s1657_s0 = scalar_lea.vmem %s98_s26, 256  ;;  %p1662_p10 = scmp.lt.s32.totalorder %s98_s26, %s98_s26 }
  0x6f   :  { %p1658_p9 = scmp.ne.s32.totalorder %s98_s26, %s1657_s0  ;;  %p1663_p11 = scmp.lt.s32.totalorder %s1657_s0, %s1657_s0 }
  0x71   :  { %p1664_p12 = por %p1663_p11, %p1662_p10 }
  0x73   :  { %p1665_p13 = pnand %p1664_p12, %p1658_p9 }
  0x75   :  { %1668 = shalt.err (!%p1665_p13)
}
  0x76   :  { %103 = dma.hbm_to_vmem [thread:$0]  %s1979_s6, 256, %s98_s26, [#allocation12], %s1727_s17, %s1727_s17, %s1728_s18  }
  0x77   :  { %1713 = dma.done.wait [#allocation3], 256  }
  0x78   :  { %1714 = vsyncadd [#allocation3], 4294967040 }
  0x79   :  { %1715 = dma.done.wait [#allocation6], 6400  }
  0x7a   :  { %1716 = vsyncadd [#allocation6], 4294960896 }
  0x7b   :  { %1717 = dma.done.wait [#allocation9], 4096  }
  0x7c   :  { %1718 = vsyncadd [#allocation9], 4294963200 }
  0x7d   :  { %1719 = dma.done.wait [#allocation12], 2304  }
  0x7e   :  { %1720 = vsyncadd [#allocation12], 4294964992  ;;  %v1736_v0 = vmov 0.0   ;;  %v138_v1 = vld [vmem:[#allocation7 + $0x8] sm:$0xff]  ;;  %v141_v2 = vld [vmem:[#allocation7 + $0x20] sm:$0xff]  ;;  %vm1737_vm0 = vmmov 0  }
  0x7f   :  { %249 = vmatprep.mubr.f32.mxu0 %v1736_v0  ;;  %v137_v3 = vld [vmem:[#allocation7] sm:$0xff]  ;;  %v1324_v4 = vpack.c.bf16 %v141_v2, %v138_v1  ;;  %v140_v5 = vld [vmem:[#allocation7 + $0x18] sm:$0xff]  ;;  %v147_v7 = vld [vmem:[#allocation7 + $0x50] sm:$0xff]  ;;  %vm501_vm1 = vcmask 64512   ;;  %s1738_s6 = smov [#allocation15]  }
  0x80   :  { %v144_v6 = vld [vmem:[#allocation7 + $0x38] sm:$0xff]  ;;  %v1326_v8 = vpack.c.bf16 %v140_v5, %v137_v3  ;;  %v143_v10 = vld [vmem:[#allocation7 + $0x30] sm:$0xff]  ;;  %v146_v11 = vld [vmem:[#allocation7 + $0x48] sm:$0xff]  ;;  %s1051_s30 = sshll.u32 %s1738_s6, 4  ;;  %s1052_s30 = int_to_ptr.vmem [resolvable:$true] %s1051_s30 }
  0x81   :  { %v1328_v9 = vpack.c.bf16 %v147_v7, %v144_v6  ;;  %v150_v12 = vld [vmem:[#allocation7 + $0x68] sm:$0xff]  ;;  %1325 = vmatprep.subr.bf16.mxu0 %v1324_v4  ;;  %v153_v13 = vld [vmem:[#allocation7 + $0x80] sm:$0xff]  ;;  %v1330_v14 = vpack.c.bf16 %v146_v11, %v143_v10  ;;  %v152_v17 = vld [vmem:[#allocation7 + $0x78] sm:$0xff]  ;;  %s1669_s22 = scalar_lea.vmem %s1052_s30, 256  ;;  %p1674_p1 = scmp.lt.s32.totalorder %s1052_s30, %s1052_s30 }
  0x82   :  { %1327 = vmatpush1.bf16.msra.mxu0 %v1326_v8  ;;  %v1332_v15 = vpack.c.bf16 %v153_v13, %v150_v12  ;;  %v149_v16 = vld [vmem:[#allocation7 + $0x60] sm:$0xff]  ;;  %v156_v18 = vld [vmem:[#allocation7 + $0x98] sm:$0xff]  ;;  %v159_v19 = vld [vmem:[#allocation7 + $0xb0] sm:$0xff]  ;;  %p1670_p0 = scmp.ne.s32.totalorder %s1052_s30, %s1669_s22  ;;  %p1675_p2 = scmp.lt.s32.totalorder %s1669_s22, %s1669_s22 }
  0x83   :  { %1329 = vmatprep.subr.bf16.mxu0 %v1328_v9  ;;  %v1334_v20 = vpack.c.bf16 %v152_v17, %v149_v16  ;;  %v1336_v21 = vpack.c.bf16 %v159_v19, %v156_v18  ;;  %v155_v22 = vld [vmem:[#allocation7 + $0x90] sm:$0xff]  ;;  %v158_v23 = vld [vmem:[#allocation7 + $0xa8] sm:$0xff]  ;;  %v165_v25 = vld [vmem:[#allocation7 + $0xe0] sm:$0xff] }
  0x84   :  { %v162_v24 = vld [vmem:[#allocation7 + $0xc8] sm:$0xff]  ;;  %v1902_v26 = vld [vmem:[#allocation2] sm:$0xff]  ;;  %v1338_v27 = vpack.c.bf16 %v158_v23, %v155_v22  ;;  %v164_v30 = vld [vmem:[#allocation7 + $0xd8] sm:$0xff]  ;;  %p1676_p3 = por %p1675_p2, %p1674_p1 }
  0x85   :  { %1196 = vmatprep.mubr.f32.mxu1 %v1902_v26  ;;  %v1340_v28 = vpack.c.bf16 %v165_v25, %v162_v24  ;;  %v161_v29 = vld [vmem:[#allocation7 + $0xc0] sm:$0xff]  ;;  %v168_v31 = vld [vmem:[#allocation7 + $0xf8] sm:$0xff]  ;;  %v171_v32 = vld [vmem:[#allocation7 + $0x110] sm:$0xff] }
  0x86   :  { %1331 = vmatpush1.bf16.msra.mxu0 %v1330_v14  ;;  %v1342_v33 = vpack.c.bf16 %v164_v30, %v161_v29  ;;  %v1344_v34 = vpack.c.bf16 %v171_v32, %v168_v31  ;;  %v167_v35 = vld [vmem:[#allocation7 + $0xf0] sm:$0xff]  ;;  %v170_v36 = vld [vmem:[#allocation7 + $0x108] sm:$0xff]  ;;  %v177_v38 = vld [vmem:[#allocation7 + $0x140] sm:$0xff]  ;;  %p1677_p4 = pnand %p1676_p3, %p1670_p0 }
  0x87   :  { %1333 = vmatprep.subr.bf16.mxu0 %v1332_v15  ;;  %v174_v37 = vld [vmem:[#allocation7 + $0x128] sm:$0xff]  ;;  %v1346_v39 = vpack.c.bf16 %v170_v36, %v167_v35  ;;  %v173_v41 = vld [vmem:[#allocation7 + $0x120] sm:$0xff]  ;;  %v176_v42 = vld [vmem:[#allocation7 + $0x138] sm:$0xff] }
  0x88   :  { %v1348_v40 = vpack.c.bf16 %v177_v38, %v174_v37  ;;  %v180_v43 = vld [vmem:[#allocation7 + $0x158] sm:$0xff]  ;;  %v183_v44 = vld [vmem:[#allocation7 + $0x170] sm:$0xff]  ;;  %v1350_v45 = vpack.c.bf16 %v176_v42, %v173_v41  ;;  %v182_v48 = vld [vmem:[#allocation7 + $0x168] sm:$0xff] }
  0x89   :  { %v1352_v46 = vpack.c.bf16 %v183_v44, %v180_v43  ;;  %v179_v47 = vld [vmem:[#allocation7 + $0x150] sm:$0xff]  ;;  %v1908_v50 = vld [vmem:[#allocation2 + $0x8] sm:$0xff]  ;;  %v1071_v51 = vld [vmem:[#allocation13 + $0x1] ss:$0 sm:$0xff] }
  0x8a   :  { %1335 = vmatpush1.bf16.msra.mxu0 %v1334_v20  ;;  %v1354_v49 = vpack.c.bf16 %v182_v48, %v179_v47  ;;  %v1070_v54 = vld [vmem:[#allocation13] ss:$0 sm:$0xff]  ;;  %v139_v61 = vld [vmem:[#allocation7 + $0x10] sm:$0xff]  ;;  %v142_v62 = vld [vmem:[#allocation7 + $0x28] sm:$0xff] }
  0x8b   :  { %1337 = vmatprep.subr.bf16.mxu0 %v1336_v21  ;;  %v145_v63 = vld [vmem:[#allocation7 + $0x40] sm:$0xff]  ;;  %v1356_v1 = vpack.c.bf16 %v142_v62, %v139_v61  ;;  %v148_v2 = vld [vmem:[#allocation7 + $0x58] sm:$0xff]  ;;  %v151_v4 = vld [vmem:[#allocation7 + $0x70] sm:$0xff] }
  0x8c   :  { %v1360_v3 = vpack.c.bf16 %v148_v2, %v145_v63  ;;  %v154_v5 = vld [vmem:[#allocation7 + $0x88] sm:$0xff]  ;;  %v157_v7 = vld [vmem:[#allocation7 + $0xa0] sm:$0xff]  ;;  %v160_v8 = vld [vmem:[#allocation7 + $0xb8] sm:$0xff] }
  0x8d   :  { %1357 = vmatprep.subr.bf16.mxu1 %v1356_v1  ;;  %v1364_v6 = vpack.c.bf16 %v154_v5, %v151_v4  ;;  %v1368_v9 = vpack.c.bf16 %v160_v8, %v157_v7  ;;  %v163_v10 = vld [vmem:[#allocation7 + $0xd0] sm:$0xff]  ;;  %v166_v11 = vld [vmem:[#allocation7 + $0xe8] sm:$0xff]  ;;  %v169_v13 = vld [vmem:[#allocation7 + $0x100] sm:$0xff] }
  0x8e   :  { %1339 = vmatpush1.bf16.msra.mxu0 %v1338_v27  ;;  %1359 = vmatpush3.bf16.msra.mxu1 %v1356_v1  ;;  %v1372_v12 = vpack.c.bf16 %v166_v11, %v163_v10  ;;  %v172_v14 = vld [vmem:[#allocation7 + $0x118] sm:$0xff]  ;;  %v175_v16 = vld [vmem:[#allocation7 + $0x130] sm:$0xff]  ;;  %v178_v17 = vld [vmem:[#allocation7 + $0x148] sm:$0xff] }
  0x8f   :  { %1341 = vmatprep.subr.bf16.mxu0 %v1340_v28  ;;  %1361 = vmatprep.subr.bf16.mxu1 %v1360_v3  ;;  %v1376_v15 = vpack.c.bf16 %v172_v14, %v169_v13  ;;  %v1380_v18 = vpack.c.bf16 %v178_v17, %v175_v16  ;;  %v181_v19 = vld [vmem:[#allocation7 + $0x160] sm:$0xff]  ;;  %v184_v20 = vld [vmem:[#allocation7 + $0x178] sm:$0xff]  ;;  %v355_v22 = vld [vmem:[#allocation5] sm:$0xff] }
  0x90   :  { %v1384_v21 = vpack.c.bf16 %v184_v20, %v181_v19  ;;  %v1073_v23 = vadd.f32 -1.0, %v355_v22  ;;  %v356_v24 = vld [vmem:[#allocation5 + $0x8] sm:$0xff]  ;;  %v1072_v48 = vld [vmem:[#allocation13 + $0x2] ss:$0 sm:$0xff]  ;;  %v678_v62 = vld [vmem:[#allocation8 + $0x30] sm:$0xff] }
  0x91   :  { %v1074_v27 = vadd.f32 -1.0, %v356_v24  ;;  %v679_v63 = vld [vmem:[#allocation8 + $0x38] sm:$0xff]  ;;  %v680_v2 = vld [vmem:[#allocation8 + $0x40] sm:$0xff]  ;;  %v682_v5 = vld [vmem:[#allocation8 + $0x50] sm:$0xff] }
  0x92   :  { %1343 = vmatpush1.bf16.msra.mxu0 %v1342_v33  ;;  %1363 = vmatpush3.bf16.msra.mxu1 %v1360_v3  ;;  %v359_v25 = vmul.f32 1e+09, %v1073_v23  ;;  %v1400_v1 = vpack.c.bf16 %v679_v63, %v678_v62  ;;  %v681_v3 = vld [vmem:[#allocation8 + $0x48] sm:$0xff]  ;;  %v684_v8 = vld [vmem:[#allocation8 + $0x60] sm:$0xff]  ;;  %v686_v17 = vld [vmem:[#allocation8 + $0x70] sm:$0xff] }
  0x93   :  { %1345 = vmatprep.subr.bf16.mxu0 %v1344_v34  ;;  %1365 = vmatprep.subr.bf16.mxu1 %v1364_v6  ;;  %v360_v31 = vmul.f32 1e+09, %v1074_v27  ;;  %v1404_v4 = vpack.c.bf16 %v681_v3, %v680_v2  ;;  %v1077_v24 = vld [vmem:[#allocation13 + $0x3] ss:$0 sm:$0xff]  ;;  %v902_v63 = vld [vmem:[#allocation11 + $0x8] sm:$0xff]  ;;  %v904_v3 = vld [vmem:[#allocation11 + $0x18] sm:$0xff] }
  0x94   :  { %v901_v62 = vld [vmem:[#allocation11] sm:$0xff] }
  0x95   :  { %v1452_v2 = vpack.c.bf16 %v902_v63, %v901_v62 }
  0x96   :  { %1347 = vmatpush1.bf16.msra.mxu0 %v1346_v39  ;;  %1367 = vmatpush3.bf16.msra.mxu1 %v1364_v6  ;;  %v683_v6 = vld [vmem:[#allocation8 + $0x58] sm:$0xff] }
  0x97   :  { %1349 = vmatprep.subr.bf16.mxu0 %v1348_v40  ;;  %1369 = vmatprep.subr.bf16.mxu1 %v1368_v9  ;;  %v1408_v7 = vpack.c.bf16 %v683_v6, %v682_v5  ;;  %v905_v5 = vld [vmem:[#allocation11 + $0x20] sm:$0xff]  ;;  %v906_v6 = vld [vmem:[#allocation11 + $0x28] sm:$0xff] }
  0x9a   :  { %1351 = vmatpush1.bf16.msra.mxu0 %v1350_v45  ;;  %1371 = vmatpush3.bf16.msra.mxu1 %v1368_v9  ;;  %v685_v9 = vld [vmem:[#allocation8 + $0x68] sm:$0xff] }
  0x9b   :  { %1353 = vmatprep.subr.bf16.mxu0 %v1352_v46  ;;  %1373 = vmatprep.subr.bf16.mxu1 %v1372_v12  ;;  %v1412_v10 = vpack.c.bf16 %v685_v9, %v684_v8  ;;  %v907_v8 = vld [vmem:[#allocation11 + $0x30] sm:$0xff]  ;;  %v908_v9 = vld [vmem:[#allocation11 + $0x38] sm:$0xff] }
  0x9e   :  { %1355 = vmatpush1.bf16.msra.mxu0 %v1354_v49  ;;  %1375 = vmatpush3.bf16.msra.mxu1 %v1372_v12 }
  0x9f   :  { %1199 = vmatprep.subr.mxu0 %v1736_v0  ;;  %1377 = vmatprep.subr.bf16.mxu1 %v1376_v15 }
  0xa1   :  { %250 = vmatmul.mubr.f32.vlgmr.msra.gmra.mrb[0].mxu0 %v1902_v26 }
  0xa2   :  { %255 = vmatprep.mubr.f32.mxu0 %v1736_v0  ;;  %1379 = vmatpush3.bf16.msra.mxu1 %v1376_v15 }
  0xa3   :  { %1381 = vmatprep.subr.bf16.mxu1 %v1380_v18 }
  0xa5   :  { %256 = vmatmul.mubr.f32.gmra.mrb[2].mxu0 %v1908_v50 }
  0xa6   :  { %1201 = vmatprep.mubr.msk.f32.mxu0 %vm1737_vm0, %v1736_v0  ;;  %1383 = vmatpush3.bf16.msra.mxu1 %v1380_v18  ;;  %v687_v18 = vld [vmem:[#allocation8 + $0x78] sm:$0xff] }
  0xa7   :  { %1385 = vmatprep.subr.bf16.mxu1 %v1384_v21  ;;  %v1416_v19 = vpack.c.bf16 %v687_v18, %v686_v17  ;;  %v913_v17 = vld [vmem:[#allocation11 + $0x60] sm:$0xff]  ;;  %v914_v18 = vld [vmem:[#allocation11 + $0x68] sm:$0xff] }
  0xaa   :  { %1387 = vmatpush3.bf16.msra.mxu1 %v1384_v21 }
  0xad   :  { %1197 = vmatmul.mubr.f32.vlgmr.msra.gmra.mrb[0].mxu1 %v1908_v50 }
 0x174   :  { %v251_v52 = vpop.f32.mrb[0].mxu0 }
 0x175   :  { %v253_v53 = vpop.f32.mrb[1].mxu0  ;;  %v341_v57 = vadd.f32 %v1070_v54, %v251_v52 }
 0x176   :  { %v347_v55 = vadd.f32 %v1071_v51, %v253_v53  ;;  %v672_v53 = vld [vmem:[#allocation8] sm:$0xff] }
 0x178   :  { %v257_v56 = vpop.f32.mrb[2].mxu0  ;;  %1200 = vmatpush3.xpose.msra.mxu0 %v347_v55  ;;  %v674_v55 = vld [vmem:[#allocation8 + $0x10] sm:$0xff] }
 0x179   :  { %v259_v58 = vpop.f32.mrb[3].mxu0  ;;  %1204 = vmatprep.subr.mxu0 %v1736_v0  ;;  %v342_v60 = vadd.f32 %v1070_v54, %v257_v56  ;;  %v673_v54 = vld [vmem:[#allocation8 + $0x8] sm:$0xff] }
 0x17a   :  { %v348_v59 = vadd.f32 %v1071_v51, %v259_v58  ;;  %v1388_v56 = vpack.c.bf16 %v673_v54, %v672_v53  ;;  %v815_v54 = vld [vmem:[#allocation10 + $0x58] sm:$0xff] }
 0x17b   :  { %1202 = vmatmul.mubr.f32.vlgmr.msra.gmra.mrb[4].mxu0 %v341_v57  ;;  %v675_v57 = vld [vmem:[#allocation8 + $0x18] sm:$0xff] }
 0x17c   :  { %1205 = vmatpush3.xpose.msra.mxu0 %v348_v59  ;;  %1206 = vmatprep.mubr.msk.f32.mxu0 %vm1737_vm0, %v1736_v0  ;;  %v1392_v58 = vpack.c.bf16 %v675_v57, %v674_v55  ;;  %v676_v59 = vld [vmem:[#allocation8 + $0x20] sm:$0xff]  ;;  %v817_v57 = vld [vmem:[#allocation10 + $0x68] sm:$0xff] }
 0x17d   :  { %1209 = vmatprep.subr.mxu0 %v1736_v0  ;;  %1389 = vmatprep.subr.bf16.mxu1 %v1388_v56 }
 0x17e   :  { %1391 = vmatpush3.bf16.msra.mxu1 %v1388_v56  ;;  %v816_v56 = vld [vmem:[#allocation10 + $0x60] sm:$0xff] }
 0x17f   :  { %1207 = vmatmul.mubr.f32.vlgmr.msra.gmra.mrb[6].mxu0 %v342_v60  ;;  %v677_v60 = vld [vmem:[#allocation8 + $0x28] sm:$0xff]  ;;  %1393 = vmatprep.subr.bf16.mxu1 %v1392_v58 }
 0x180   :  { %1211 = vmatprep.mubr.msk.f32.mxu0 %vm1737_vm0, %v1736_v0  ;;  %v1198_v47 = vpop.f32.mrb[0].mxu1  ;;  %v1396_v61 = vpack.c.bf16 %v677_v60, %v676_v59  ;;  %v818_v59 = vld [vmem:[#allocation10 + $0x70] sm:$0xff]  ;;  %v819_v60 = vld [vmem:[#allocation10 + $0x78] sm:$0xff] }
 0x181   :  { %v328_v49 = vpop.f32.mrb[1].mxu1  ;;  %v354_v51 = vadd.f32 %v1198_v47, %v1072_v48  ;;  %v811_v47 = vld [vmem:[#allocation10 + $0x38] sm:$0xff] }
 0x182   :  { %v353_v52 = vadd.f32 %v1072_v48, %v328_v49  ;;  %1395 = vmatpush3.bf16.msra.mxu1 %v1392_v58  ;;  %v812_v49 = vld [vmem:[#allocation10 + $0x40] sm:$0xff]  ;;  %v1444_v58 = vpack.c.bf16 %v817_v57, %v816_v56 }
 0x183   :  { %1397 = vmatprep.subr.bf16.mxu1 %v1396_v61 }
 0x184   :  { %1210 = vmatpush3.msra.mxu0 %v353_v52  ;;  %v814_v52 = vld [vmem:[#allocation10 + $0x50] sm:$0xff] }
 0x185   :  { %1214 = vmatprep.subr.mxu0 %v1736_v0  ;;  %v1440_v55 = vpack.c.bf16 %v815_v54, %v814_v52 }
 0x186   :  { %1399 = vmatpush3.bf16.msra.mxu1 %v1396_v61  ;;  %v1448_v61 = vpack.c.bf16 %v819_v60, %v818_v59 }
 0x187   :  { %1401 = vmatprep.subr.bf16.mxu1 %v1400_v1 }
 0x18a   :  { %1403 = vmatpush3.bf16.msra.mxu1 %v1400_v1  ;;  %v903_v1 = vld [vmem:[#allocation11 + $0x10] sm:$0xff] }
 0x18b   :  { %1405 = vmatprep.subr.bf16.mxu1 %v1404_v4 }
 0x18e   :  { %1407 = vmatpush3.bf16.msra.mxu1 %v1404_v4  ;;  %v1456_v4 = vpack.c.bf16 %v904_v3, %v903_v1 }
 0x18f   :  { %1409 = vmatprep.subr.bf16.mxu1 %v1408_v7 }
 0x192   :  { %1411 = vmatpush3.bf16.msra.mxu1 %v1408_v7  ;;  %v1460_v7 = vpack.c.bf16 %v906_v6, %v905_v5 }
 0x193   :  { %1413 = vmatprep.subr.bf16.mxu1 %v1412_v10 }
 0x196   :  { %1415 = vmatpush3.bf16.msra.mxu1 %v1412_v10  ;;  %v1464_v10 = vpack.c.bf16 %v908_v9, %v907_v8 }
 0x197   :  { %1417 = vmatprep.subr.bf16.mxu1 %v1416_v19 }
 0x19a   :  { %1419 = vmatpush3.bf16.msra.mxu1 %v1416_v19  ;;  %v1476_v19 = vpack.c.bf16 %v914_v18, %v913_v17 }
 0x19b   :  { %1453 = vmatprep.subr.bf16.mxu1 %v1452_v2 }
 0x24e   :  { %v427_v28 = vpop.f32.mrb[4].mxu0 }
 0x24f   :  { %v428_v29 = vadd.f32 %v427_v28, %v359_v25  ;;  %v1203_v30 = vpop.f32.mrb[5].mxu0 }
 0x251   :  { %v502_v32 = vsel %vm501_vm1, %v428_v29, -inf }
 0x252   :  { %503 = vmax.xlane.f32.xlu0 %v502_v32  ;;  %v497_v33 = vpop.f32.mrb[6].mxu0  ;;  %v805_v32 = vld [vmem:[#allocation10 + $0x8] sm:$0xff] }
 0x253   :  { %v498_v34 = vadd.f32 %v497_v33, %v360_v31  ;;  %v1208_v35 = vpop.f32.mrb[7].mxu0  ;;  %v804_v31 = vld [vmem:[#allocation10] sm:$0xff]  ;;  %v806_v33 = vld [vmem:[#allocation10 + $0x10] sm:$0xff] }
 0x254   :  { %v807_v35 = vld [vmem:[#allocation10 + $0x18] sm:$0xff] }
 0x255   :  { %v505_v36 = vsel %vm501_vm1, %v498_v34, -inf }
 0x256   :  { %506 = vmax.xlane.f32.xlu0 %v505_v36  ;;  %v1424_v36 = vpack.c.bf16 %v807_v35, %v806_v33 }
 0x2df   :  { %v504_v37 = vpop.xlane.xlu0 %503 }
 0x2e0   :  { %v508_v38 = vsub.f32 %v428_v29, %v504_v37  ;;  %v808_v37 = vld [vmem:[#allocation10 + $0x20] sm:$0xff] }
 0x2e2   :  { %v510_v39 = vmul.f32 1.442695, %v508_v38  ;;  %v809_v38 = vld [vmem:[#allocation10 + $0x28] sm:$0xff] }
 0x2e3   :  { %v507_v40 = vpop.xlane.xlu0 %506 }
 0x2e4   :  { %1499 = vpow2.f32 %v510_v39  ;;  %v509_v41 = vsub.f32 %v498_v34, %v507_v40  ;;  %v1420_v34 = vpack.c.bf16 %v805_v32, %v804_v31  ;;  %v1428_v39 = vpack.c.bf16 %v809_v38, %v808_v37  ;;  %v1079_v31 = vld [vmem:[#allocation13 + $0x7] ss:$0 sm:$0xff]  ;;  %v916_v37 = vld [vmem:[#allocation11 + $0x78] sm:$0xff] }
 0x2e6   :  { %v512_v42 = vmul.f32 1.442695, %v509_v41 }
 0x2e8   :  { %1501 = vpow2.f32 %v512_v42 }
 0x2ee   :  { %v1500_v43 = vpop.eup %1499 }
 0x2ef   :  { %v514_v44 = vsel %vm501_vm1, %v1500_v43, 0.0 }
 0x2f0   :  { %515 = vadd.xlane.f32.xlu1 %v514_v44 }
 0x2f2   :  { %v1502_v45 = vpop.eup %1501 }
 0x2f3   :  { %v517_v46 = vsel %vm501_vm1, %v1502_v45, 0.0 }
 0x2f4   :  { %518 = vadd.xlane.f32.xlu1 %v517_v46  ;;  %v810_v46 = vld [vmem:[#allocation10 + $0x30] sm:$0xff] }
 0x2f5   :  { %v1432_v48 = vpack.c.bf16 %v811_v47, %v810_v46 }
 0x37d   :  { %v516_v11 = vpop.xlane.xlu1 %515 }
 0x37e   :  { %1503 = vrcp.f32 %v516_v11  ;;  %v909_v11 = vld [vmem:[#allocation11 + $0x40] sm:$0xff] }
 0x381   :  { %v519_v12 = vpop.xlane.xlu1 %518 }
 0x382   :  { %1505 = vrcp.f32 %v519_v12  ;;  %v910_v12 = vld [vmem:[#allocation11 + $0x48] sm:$0xff] }
 0x388   :  { %v1504_v13 = vpop.eup %1503 }
 0x389   :  { %v522_v14 = vmul.f32 %v1504_v13, %v1500_v43  ;;  %v1468_v13 = vpack.c.bf16 %v910_v12, %v909_v11 }
 0x38b   :  { %524 = vst.msk [vmem:[#allocation15] sm:$0xff] %vm501_vm1, %v522_v14  ;;  %1212 = vmatmul.mubr.msk.f32.vlgmr.msra.gmra.mrb[8].mxu0 %vm501_vm1, %v522_v14  ;;  %v911_v14 = vld [vmem:[#allocation11 + $0x50] sm:$0xff] }
 0x38c   :  { %v1506_v15 = vpop.eup %1505  ;;  %1215 = vmatpush3.msra.mxu0 %v354_v51  ;;  %1216 = vmatprep.mubr.msk.f32.mxu0 %vm1737_vm0, %v1736_v0  ;;  %v813_v51 = vld [vmem:[#allocation10 + $0x48] sm:$0xff] }
 0x38d   :  { %v523_v16 = vmul.f32 %v1506_v15, %v1502_v45  ;;  %1421 = vmatprep.subr.bf16.mxu0 %v1420_v34  ;;  %v1436_v53 = vpack.c.bf16 %v813_v51, %v812_v49  ;;  %v912_v15 = vld [vmem:[#allocation11 + $0x58] sm:$0xff] }
 0x38f   :  { %525 = vst.msk [vmem:[#allocation15 + $0x8] sm:$0xff] %vm501_vm1, %v523_v16  ;;  %1217 = vmatmul.mubr.msk.f32.vlgmr.msra.gmra.mrb[10].mxu0 %vm501_vm1, %v523_v16  ;;  %v1472_v16 = vpack.c.bf16 %v912_v15, %v911_v14 }
 0x390   :  { %1423 = vmatpush3.bf16.msra.mxu0 %v1420_v34 }
 0x391   :  { %1425 = vmatprep.subr.bf16.mxu0 %v1424_v36 }
 0x394   :  { %1427 = vmatpush3.bf16.msra.mxu0 %v1424_v36  ;;  %v915_v36 = vld [vmem:[#allocation11 + $0x70] sm:$0xff] }
 0x395   :  { %1429 = vmatprep.subr.bf16.mxu0 %v1428_v39  ;;  %v1480_v38 = vpack.c.bf16 %v916_v37, %v915_v36 }
 0x398   :  { %1431 = vmatpush3.bf16.msra.mxu0 %v1428_v39  ;;  %v1080_v39 = vld [vmem:[#allocation13 + $0x4] ss:$0 sm:$0xff] }
 0x399   :  { %1433 = vmatprep.subr.bf16.mxu0 %v1432_v48 }
 0x39c   :  { %1435 = vmatpush3.bf16.msra.mxu0 %v1432_v48 }
 0x39d   :  { %1437 = vmatprep.subr.bf16.mxu0 %v1436_v53 }
 0x3a0   :  { %1439 = vmatpush3.bf16.msra.mxu0 %v1436_v53 }
 0x3a1   :  { %1441 = vmatprep.subr.bf16.mxu0 %v1440_v55 }
 0x3a4   :  { %1443 = vmatpush3.bf16.msra.mxu0 %v1440_v55 }
 0x3a5   :  { %1445 = vmatprep.subr.bf16.mxu0 %v1444_v58 }
 0x3a8   :  { %1447 = vmatpush3.bf16.msra.mxu0 %v1444_v58 }
 0x3a9   :  { %1449 = vmatprep.subr.bf16.mxu0 %v1448_v61 }
 0x3ac   :  { %1451 = vmatpush3.bf16.msra.mxu0 %v1448_v61 }
 0x45e   :  { %v595_v20 = vpop.f32.mrb[8].mxu0 }
 0x45f   :  { %v1213_v21 = vpop.f32.mrb[9].mxu0  ;;  %1251 = vmatprep.mubr.f32.mxu1 %v595_v20 }
 0x462   :  { %v668_v22 = vpop.f32.mrb[10].mxu0 }
 0x463   :  { %v1218_v23 = vpop.f32.mrb[11].mxu0  ;;  %1252 = vmatmul.mubr.f32.vlgmr.msra.gmra.mrb[2].mxu1 %v668_v22 }
 0x464   :  { %1455 = vmatpush3.bf16.msra.mxu1 %v1452_v2 }
 0x465   :  { %1457 = vmatprep.subr.bf16.mxu1 %v1456_v4 }
 0x468   :  { %1459 = vmatpush3.bf16.msra.mxu1 %v1456_v4 }
 0x469   :  { %1461 = vmatprep.subr.bf16.mxu1 %v1460_v7 }
 0x46c   :  { %1463 = vmatpush3.bf16.msra.mxu1 %v1460_v7 }
 0x46d   :  { %1465 = vmatprep.subr.bf16.mxu1 %v1464_v10 }
 0x470   :  { %1467 = vmatpush3.bf16.msra.mxu1 %v1464_v10 }
 0x471   :  { %1469 = vmatprep.subr.bf16.mxu1 %v1468_v13 }
 0x474   :  { %1471 = vmatpush3.bf16.msra.mxu1 %v1468_v13 }
 0x475   :  { %1473 = vmatprep.subr.bf16.mxu1 %v1472_v16 }
 0x478   :  { %1475 = vmatpush3.bf16.msra.mxu1 %v1472_v16 }
 0x479   :  { %1477 = vmatprep.subr.bf16.mxu1 %v1476_v19 }
 0x47c   :  { %1479 = vmatpush3.bf16.msra.mxu1 %v1476_v19 }
 0x47d   :  { %1481 = vmatprep.subr.bf16.mxu1 %v1480_v38 }
 0x480   :  { %1483 = vmatpush3.bf16.msra.mxu1 %v1480_v38 }
 0x536   :  { %v1253_v25 = vpop.f32.mrb[2].mxu1 }
 0x537   :  { %v764_v27 = vadd.f32 %v1253_v25, %v1077_v24  ;;  %v758_v0 = vpop.f32.mrb[3].mxu1 }
 0x538   :  { %v759_v28 = vadd.f32 %v1077_v24, %v758_v0  ;;  %v1078_v0 = vld [vmem:[#allocation13 + $0x6] ss:$0 sm:$0xff] }
 0x539   :  { %v768_v29 = vadd.f32 %v764_v27, %v1908_v50 }
 0x53a   :  { %v767_v30 = vadd.f32 %v759_v28, %v1902_v26 }
 0x53b   :  { %771 = vadd.xlane.f32.xlu1 %v768_v29 }
 0x53c   :  { %769 = vadd.xlane.f32.xlu0 %v767_v30 }
 0x5c8   :  { %v772_v50 = vpop.xlane.xlu1 %771 }
 0x5c9   :  { %v775_v40 = vmul.f32 0.0078125, %v772_v50  ;;  %v770_v26 = vpop.xlane.xlu0 %769 }
 0x5ca   :  { %v774_v41 = vmul.f32 0.0078125, %v770_v26 }
 0x5cb   :  { %v1933_v42 = vsub.f32 %v768_v29, %v775_v40 }
 0x5cc   :  { %v1935_v43 = vsub.f32 %v767_v30, %v774_v41 }
 0x5cd   :  { %v779_v44 = vmul.f32 %v1933_v42, %v1933_v42 }
 0x5ce   :  { %v778_v45 = vmul.f32 %v1935_v43, %v1935_v43 }
 0x5cf   :  { %782 = vadd.xlane.f32.xlu1 %v779_v44 }
 0x5d0   :  { %780 = vadd.xlane.f32.xlu0 %v778_v45 }
 0x65c   :  { %v783_v20 = vpop.xlane.xlu1 %782 }
 0x65d   :  { %v785_v21 = vmul.f32 0.0078125, %v783_v20  ;;  %v781_v22 = vpop.xlane.xlu0 %780 }
 0x65e   :  { %v784_v23 = vmul.f32 0.0078125, %v781_v22 }
 0x65f   :  { %v787_v24 = vadd.f32 1e-05, %v785_v21 }
 0x660   :  { %v786_v25 = vadd.f32 1e-05, %v784_v23 }
 0x661   :  { %1507 = vrsqrt.f32 %v787_v24 }
 0x662   :  { %1509 = vrsqrt.f32 %v786_v25 }
 0x66b   :  { %v1508_v27 = vpop.eup %1507 }
 0x66c   :  { %v1510_v28 = vpop.eup %1509  ;;  %v791_v29 = vmul.f32 %v1508_v27, %v1933_v42 }
 0x66d   :  { %v790_v30 = vmul.f32 %v1510_v28, %v1935_v43  ;;  %v1081_v43 = vld [vmem:[#allocation13 + $0x5] ss:$0 sm:$0xff] }
 0x66e   :  { %v797_v32 = vmul.f32 %v1078_v0, %v791_v29 }
 0x66f   :  { %v796_v33 = vmul.f32 %v1078_v0, %v790_v30 }
 0x670   :  { %v803_v35 = vadd.f32 %v1079_v31, %v797_v32 }
 0x671   :  { %v802_v34 = vadd.f32 %v1079_v31, %v796_v33 }
 0x673   :  { %1286 = vmatprep.mubr.f32.mxu0 %v802_v34 }
 0x674   :  { %1287 = vmatmul.mubr.f32.vlgmr.msra.gmra.mrb[12].mxu0 %v803_v35 }
 0x747   :  { %v1288_v50 = vpop.f32.mrb[12].mxu0 }
 0x748   :  { %v896_v40 = vadd.f32 %v1288_v50, %v1080_v39  ;;  %v890_v26 = vpop.f32.mrb[13].mxu0 }
 0x749   :  { %v891_v41 = vadd.f32 %v1080_v39, %v890_v26 }
 0x74a   :  { %v900_v44 = vmax.f32 %v896_v40, 0.0 }
 0x74b   :  { %v899_v42 = vmax.f32 %v891_v41, 0.0 }
 0x74d   :  { %1321 = vmatprep.mubr.f32.mxu1 %v899_v42 }
 0x74e   :  { %1322 = vmatmul.mubr.f32.vlgmr.msra.gmra.mrb[4].mxu1 %v900_v44 }
 0x821   :  { %v1323_v45 = vpop.f32.mrb[4].mxu1 }
 0x822   :  { %v993_v46 = vadd.f32 %v1323_v45, %v1081_v43  ;;  %v987_v47 = vpop.f32.mrb[5].mxu1 }
 0x823   :  { %v988_v48 = vadd.f32 %v1081_v43, %v987_v47 }
 0x824   :  { %v997_v49 = vadd.f32 %v993_v46, %v803_v35 }
 0x825   :  { %v996_v51 = vadd.f32 %v988_v48, %v802_v34 }
 0x826   :  { %1000 = vadd.xlane.f32.xlu1 %v997_v49 }
 0x827   :  { %998 = vadd.xlane.f32.xlu0 %v996_v51 }
 0x8b3   :  { %v1001_v52 = vpop.xlane.xlu1 %1000 }
 0x8b4   :  { %v1003_v53 = vmul.f32 0.0078125, %v1001_v52  ;;  %v999_v54 = vpop.xlane.xlu0 %998 }
 0x8b5   :  { %v1002_v55 = vmul.f32 0.0078125, %v999_v54 }
 0x8b6   :  { %v1005_v56 = vsub.f32 %v997_v49, %v1003_v53 }
 0x8b7   :  { %v1004_v57 = vsub.f32 %v996_v51, %v1002_v55 }
 0x8b8   :  { %v1007_v58 = vmul.f32 %v1005_v56, %v1005_v56 }
 0x8b9   :  { %v1006_v59 = vmul.f32 %v1004_v57, %v1004_v57 }
 0x8ba   :  { %1010 = vadd.xlane.f32.xlu1 %v1007_v58 }
 0x8bb   :  { %1008 = vadd.xlane.f32.xlu0 %v1006_v59 }
 0x8bc   :  { %1680 = shalt.err (!%p1677_p4)
}
 0x8bd   :  { %s1681_s25 = scalar_lea.hbm %s1981_s8, 256 }
 0x8be   :  { %p1682_p5 = scmp.ne.s32.totalorder %s1981_s8, %s1681_s25  ;;  %p1685_p6 = scmp.lt.u32.totalorder %s1681_s25, %s1981_s8 }
 0x8c0   :  { %p1687_p7 = pnand %p1685_p6, %p1682_p5 }
 0x8c2   :  { %1690 = shalt.err (!%p1687_p7)
}
 0x8c3   :  { %1057 = dma.vmem_to_hbm [thread:$0]  %s1052_s30, 256, %s1981_s8, [#allocation16], %s1727_s17, %s1727_s17, %s1728_s18   ;;  %v1082_v4 = vld [vmem:[#allocation13 + $0x8] ss:$0 sm:$0xff]  ;;  %v1083_v7 = vld [vmem:[#allocation13 + $0x9] ss:$0 sm:$0xff] }
 0x8c4   :  { %s1739_s9 = smov [#allocation14]  }
 0x8c5   :  { %s1039_s10 = sshll.u32 %s1739_s9, 4  ;;  %s1040_s10 = int_to_ptr.vmem [resolvable:$true] %s1039_s10 }
 0x8c6   :  { %s1691_s8 = scalar_lea.vmem %s1040_s10, 256  ;;  %p1696_p9 = scmp.lt.s32.totalorder %s1040_s10, %s1040_s10 }
 0x8c7   :  { %p1692_p8 = scmp.ne.s32.totalorder %s1040_s10, %s1691_s8  ;;  %p1697_p10 = scmp.lt.s32.totalorder %s1691_s8, %s1691_s8 }
 0x8c9   :  { %p1698_p11 = por %p1697_p10, %p1696_p9 }
 0x8cb   :  { %p1699_p12 = pnand %p1698_p11, %p1692_p8 }
 0x947   :  { %v1011_v60 = vpop.xlane.xlu1 %1010 }
 0x948   :  { %v1013_v61 = vmul.f32 0.0078125, %v1011_v60  ;;  %v1009_v62 = vpop.xlane.xlu0 %1008 }
 0x949   :  { %v1012_v63 = vmul.f32 0.0078125, %v1009_v62 }
 0x94a   :  { %v1015_v1 = vadd.f32 1e-05, %v1013_v61 }
 0x94b   :  { %v1014_v2 = vadd.f32 1e-05, %v1012_v63 }
 0x94c   :  { %1511 = vrsqrt.f32 %v1015_v1 }
 0x94d   :  { %1513 = vrsqrt.f32 %v1014_v2 }
 0x956   :  { %v1512_v3 = vpop.eup %1511 }
 0x957   :  { %v1514_v5 = vpop.eup %1513  ;;  %v1019_v6 = vmul.f32 %v1512_v3, %v1005_v56 }
 0x958   :  { %v1018_v8 = vmul.f32 %v1514_v5, %v1004_v57 }
 0x959   :  { %v1025_v9 = vmul.f32 %v1082_v4, %v1019_v6 }
 0x95a   :  { %v1024_v10 = vmul.f32 %v1082_v4, %v1018_v8 }
 0x95b   :  { %v1031_v11 = vadd.f32 %v1083_v7, %v1025_v9 }
 0x95c   :  { %v1030_v12 = vadd.f32 %v1083_v7, %v1024_v10 }
 0x95d   :  { %1033 = vst [vmem:[#allocation14 + $0x8] sm:$0xff] %v1031_v11 }
 0x95e   :  { %1032 = vst [vmem:[#allocation14] sm:$0xff] %v1030_v12 }
 0x95f   :  { %1702 = shalt.err (!%p1699_p12)
}
 0x960   :  { %s1703_s13 = scalar_lea.hbm %s1980_s7, 256 }
 0x961   :  { %p1704_p13 = scmp.ne.s32.totalorder %s1980_s7, %s1703_s13  ;;  %p1707_p0 = scmp.lt.u32.totalorder %s1703_s13, %s1980_s7 }
 0x963   :  { %p1709_p1 = pnand %p1707_p0, %p1704_p13 }
 0x965   :  { %1712 = shalt.err (!%p1709_p1)
}
 0x966   :  { %1045 = dma.vmem_to_hbm [thread:$0]  %s1040_s10, 256, %s1980_s7, [#allocation4], %s1727_s17, %s1727_s17, %s1728_s18  }
 0x967   :  { %1721 = dma.done.wait [#allocation4], 256  }
 0x968   :  { %1722 = vsyncadd [#allocation4], 4294967040 }
 0x969   :  { %1723 = dma.done.wait [#allocation16], 256  }
 0x96a   :  { %1724 = vsyncadd [#allocation16], 4294967040 }
 0x96b   :  { %1064 = vsyncpa [#allocation3], 1 }
 0x96c   :  { %1065 = vsyncpa [#allocation6], 1 }
 0x96d   :  { %1066 = vsyncpa [#allocation9], 1 }
 0x96e   :  { %1067 = vsyncpa [#allocation12], 1 }
 0x96f   :  { %1068 = vsyncpa [#allocation4], 1 }
 0x970   :  { %1069 = vsyncpa [#allocation16], 1 }

</bundles_post_ra>
